<compile_context>
chip_gen: v6e
topology: v6e:2x2x1
jax: 0.10.0
libtpu: 0.0.40
codegen_flags: <defaults>
</compile_context>

<pallas_src>
import math
from functools import partial

import jax
import jax.numpy as jnp
from jax.experimental import pallas as pl
from jax.experimental.pallas import tpu as pltpu


def _mha_kernel(q_ref, k_ref, v_ref, wq_ref, wk_ref, wv_ref, wfc_ref,
                gamma_ref, beta_ref, out_ref, attn_ref, qn_scr, *, eps):
    """One (batch_block, head) grid step.

    q_ref:  (bb, Lq, D)  f32      k_ref/v_ref: (bb, Lk, D)  bf16
    wq_ref/wk_ref: (1, D, d_k) bf16   wv_ref: (1, D, d_v) bf16
    wfc_ref: (1, d_v, D) bf16     gamma/beta: (1, D) f32
    out_ref: (bb, Lq, D) f32  (resident across the head axis, accumulated)
    attn_ref: (bb, 1, Lq, Lk)
    qn_scr: (bb*Lq, D) bf16 scratch holding LayerNorm(q), computed at h == 0.
    """
    h = pl.program_id(1)
    bb, Lq, D = q_ref.shape
    Lk = k_ref.shape[1]
    d_k = wq_ref.shape[2]
    d_v = wv_ref.shape[2]
    R = bb * Lq

    # ---- once per batch block: LayerNorm(q) (f32) + residual into out_ref ----
    @pl.when(h == 0)
    def _init():
        qb = q_ref[...]                                     # (bb, Lq, D) f32
        q2 = qb.reshape(R, D)
        mean = jnp.mean(q2, axis=-1, keepdims=True)
        var = jnp.mean((q2 - mean) ** 2, axis=-1, keepdims=True)
        qn = (q2 - mean) * jax.lax.rsqrt(var + eps)
        qn = qn * gamma_ref[...] + beta_ref[...]            # gamma/beta (1, D)
        qn_scr[...] = qn.astype(jnp.bfloat16)
        out_ref[...] = qb                                   # residual (pre-LN)

    # ---- per-head projections: bf16 MXU operands, f32 accumulation ----
    # 1/sqrt(d_k) is folded into wq in the wrapper.
    k2 = k_ref[...].reshape(bb * Lk, D)                     # bf16 from wrapper
    v2 = v_ref[...].reshape(bb * Lk, D)
    Qh = jnp.dot(qn_scr[...], wq_ref[0], preferred_element_type=jnp.float32)
    Kh = jnp.dot(k2, wk_ref[0], preferred_element_type=jnp.float32)
    Vh = jnp.dot(v2, wv_ref[0], preferred_element_type=jnp.float32)

    Qh = Qh.reshape(bb, Lq, d_k).astype(jnp.bfloat16)
    Kh = Kh.reshape(bb, Lk, d_k).astype(jnp.bfloat16)
    Vh = Vh.reshape(bb, Lk, d_v).astype(jnp.bfloat16)

    # ---- scores + softmax (f32 elementwise math), single-batch-dim einsums ----
    s = jnp.einsum('bqd,bkd->bqk', Qh, Kh,
                   preferred_element_type=jnp.float32)      # (bb, Lq, Lk)
    s = s - jnp.max(s, axis=-1, keepdims=True)
    e = jnp.exp(s)
    denom = jnp.sum(e, axis=-1, keepdims=True)
    attn = e * pl.reciprocal(denom, approx=True)            # EUP slot
    attn_ref[:, 0, :, :] = attn.astype(attn_ref.dtype)

    # ---- attn @ V and the head's slice of the fc projection ----
    ho = jnp.einsum('bqk,bkd->bqd', attn.astype(jnp.bfloat16), Vh,
                    preferred_element_type=jnp.float32)     # (bb, Lq, d_v)
    contrib = jnp.dot(ho.reshape(R, d_v).astype(jnp.bfloat16), wfc_ref[0],
                      preferred_element_type=jnp.float32)   # (R, D)
    out_ref[...] += contrib.reshape(bb, Lq, D)


def _vmem_capacity_bytes():
    """Physical VMEM per TensorCore; fall back to the most restrictive (v7x)."""
    try:
        info = pltpu.get_tpu_info()
        cap = getattr(info, "vmem_capacity_bytes", None)
        if cap:
            return int(cap)
    except Exception:
        pass
    return 64 * 1024 * 1024


def _per_step_vmem_bytes(bb, Lq, Lk, D, d_k, d_v, attn_itemsize):
    """Rough per-grid-step VMEM footprint (double-buffered blocks + scratch)."""
    dbuf = 2
    q_blk = dbuf * bb * Lq * D * 4                      # f32 q
    kv_blk = dbuf * 2 * bb * Lk * D * 2                 # bf16 k, v
    out_blk = dbuf * bb * Lq * D * 4                    # f32 out
    attn_blk = dbuf * bb * Lq * Lk * attn_itemsize      # attn (one head)
    qn_scratch = bb * Lq * D * 2                        # bf16 LN(q)
    interm = 3 * bb * Lq * Lk * 4 + 2 * bb * Lk * max(d_k, d_v) * 4
    weights = dbuf * 2 * (2 * D * d_k + 2 * D * d_v)    # bf16 per-head weights
    return q_blk + kv_blk + out_blk + attn_blk + qn_scratch + interm + weights


def _pick_batch_block(B, Lq, Lk, D, d_k, d_v, attn_itemsize, vmem_budget):
    """Largest divisor of B that (a) fits the VMEM budget and (b) keeps at
    least 2 grid steps on the parallel batch axis when B >= 2 (v7x has 2 TCs)."""
    cap = max(1, B // 2)
    best = 1
    for bb in range(1, cap + 1):
        if B % bb == 0 and _per_step_vmem_bytes(
                bb, Lq, Lk, D, d_k, d_v, attn_itemsize) <= vmem_budget:
            best = bb
    return best


def multi_head_attention(q, k, v, wq_t, wk_t, wv_t, wfc_t, gamma, beta,
                         *, n_head, d_k, d_v, eps=1e-6, batch_block=None,
                         attn_dtype=jnp.float32):
    """q, k, v: (seq, batch, d_model) float32 (PyTorch module convention).

    wq_t, wk_t, wv_t: (d_model, n_head*d_k / d_v) = transposed nn.Linear weights.
    wfc_t:            (n_head*d_v, d_model).
    Returns (output, attn) with the exact PyTorch shapes.  attn_dtype can be
    set to bfloat16 to halve the attention-probability writeback when the
    caller tolerates it (default float32 matches the PyTorch module).
    """
    Lq, B, D = q.shape
    Lk = k.shape[0]

    # Glue: the module's .transpose(0, 1) -> (batch, seq, d_model).
    q_bld = jnp.transpose(q, (1, 0, 2)).astype(jnp.float32)
    # k / v are only ever bf16 MXU operands inside the kernel -> ship bf16.
    k_bld = jnp.transpose(k, (1, 0, 2)).astype(jnp.bfloat16)
    v_bld = jnp.transpose(v, (1, 0, 2)).astype(jnp.bfloat16)

    # Per-generation sizing.
    vmem_cap = _vmem_capacity_bytes()
    vmem_limit = max(32 * 1024 * 1024, int(vmem_cap * 0.85))
    attn_itemsize = jnp.dtype(attn_dtype).itemsize
    if batch_block is None:
        batch_block = _pick_batch_block(B, Lq, Lk, D, d_k, d_v, attn_itemsize,
                                        vmem_budget=int(vmem_cap * 0.6))
    assert B % batch_block == 0
    nb = B // batch_block

    # Parameter preparation (one-time host/XLA-side transform in a real model):
    # fold 1/sqrt(d_k) into w_qs, stack weights per head on a leading axis so
    # the kernel never lane-slices, cast to bf16 for the MXU.
    scale = 1.0 / math.sqrt(d_k)
    wq_s = (wq_t * scale).reshape(D, n_head, d_k).transpose(1, 0, 2).astype(jnp.bfloat16)
    wk_s = wk_t.reshape(D, n_head, d_k).transpose(1, 0, 2).astype(jnp.bfloat16)
    wv_s = wv_t.reshape(D, n_head, d_v).transpose(1, 0, 2).astype(jnp.bfloat16)
    wfc_s = wfc_t.reshape(n_head, d_v, D).astype(jnp.bfloat16)
    gamma2 = gamma.reshape(1, D).astype(jnp.float32)
    beta2 = beta.reshape(1, D).astype(jnp.float32)

    kernel = partial(_mha_kernel, eps=eps)

    out_shapes = (
        jax.ShapeDtypeStruct((B, Lq, D), jnp.float32),              # output
        jax.ShapeDtypeStruct((B, n_head, Lq, Lk), attn_dtype),      # attn
    )

    grid_spec = pltpu.PrefetchScalarGridSpec(
        num_scalar_prefetch=0,
        grid=(nb, n_head),              # head axis innermost ("arbitrary")
        in_specs=[
            pl.BlockSpec((batch_block, Lq, D), lambda b, h: (b, 0, 0)),
            pl.BlockSpec((batch_block, Lk, D), lambda b, h: (b, 0, 0)),
            pl.BlockSpec((batch_block, Lk, D), lambda b, h: (b, 0, 0)),
            pl.BlockSpec((1, D, d_k), lambda b, h: (h, 0, 0)),
            pl.BlockSpec((1, D, d_k), lambda b, h: (h, 0, 0)),
            pl.BlockSpec((1, D, d_v), lambda b, h: (h, 0, 0)),
            pl.BlockSpec((1, d_v, D), lambda b, h: (h, 0, 0)),
            pl.BlockSpec((1, D), lambda b, h: (0, 0)),
            pl.BlockSpec((1, D), lambda b, h: (0, 0)),
        ],
        out_specs=[
            pl.BlockSpec((batch_block, Lq, D), lambda b, h: (b, 0, 0)),
            pl.BlockSpec((batch_block, 1, Lq, Lk), lambda b, h: (b, h, 0, 0)),
        ],
        scratch_shapes=[
            pltpu.VMEM((batch_block * Lq, D), jnp.bfloat16),   # LN(q), reused per head
        ],
    )

    return pl.pallas_call(
        kernel,
        out_shape=out_shapes,
        grid_spec=grid_spec,
        compiler_params=pltpu.CompilerParams(
            dimension_semantics=("parallel", "arbitrary"),
            vmem_limit_bytes=vmem_limit),
    )(q_bld, k_bld, v_bld, wq_s, wk_s, wv_s, wfc_s, gamma2, beta2)


def _reference(q, k, v, wq_t, wk_t, wv_t, wfc_t, gamma, beta,
               *, n_head, d_k, d_v, eps=1e-6):
    """Pure-JAX f32 reference mirroring the PyTorch forward (eval mode)."""
    qb = jnp.transpose(q, (1, 0, 2))
    kb = jnp.transpose(k, (1, 0, 2))
    vb = jnp.transpose(v, (1, 0, 2))
    B, Lq, D = qb.shape
    Lk = kb.shape[1]
    residual = qb

    mean = jnp.mean(qb, axis=-1, keepdims=True)
    var = jnp.mean((qb - mean) ** 2, axis=-1, keepdims=True)
    qn = (qb - mean) / jnp.sqrt(var + eps) * gamma + beta

    Q = (qn @ wq_t).reshape(B, Lq, n_head, d_k).transpose(0, 2, 1, 3)
    K = (kb @ wk_t).reshape(B, Lk, n_head, d_k).transpose(0, 2, 1, 3)
    V = (vb @ wv_t).reshape(B, Lk, n_head, d_v).transpose(0, 2, 1, 3)

    scores = jnp.einsum("bhqd,bhkd->bhqk", Q / math.sqrt(d_k), K)
    attn = jax.nn.softmax(scores, axis=-1)
    out = jnp.einsum("bhqk,bhkd->bhqd", attn, V)
    out = out.transpose(0, 2, 1, 3).reshape(B, Lq, n_head * d_v)
    out = out @ wfc_t + residual
    return out, attn


if __name__ == "__main__":
    # Small, module-consistent shapes.
    n_head, d_model, d_k, d_v = 2, 32, 16, 16
    seq, batch = 8, 2

    key = jax.random.PRNGKey(0)
    kq, kk, kv, k1, k2, k3, k4 = jax.random.split(key, 7)

    # Inputs: (seq, batch, d_model), as the PyTorch module expects.
    q_in = jax.random.normal(kq, (seq, batch, d_model), jnp.float32)
    k_in = jax.random.normal(kk, (seq, batch, d_model), jnp.float32)
    v_in = jax.random.normal(kv, (seq, batch, d_model), jnp.float32)

    # Deterministic synthetic parameters (transposed nn.Linear weights).
    s = 1.0 / math.sqrt(d_model)
    wq_t = jax.random.normal(k1, (d_model, n_head * d_k), jnp.float32) * s
    wk_t = jax.random.normal(k2, (d_model, n_head * d_k), jnp.float32) * s
    wv_t = jax.random.normal(k3, (d_model, n_head * d_v), jnp.float32) * s
    wfc_t = jax.random.normal(k4, (n_head * d_v, d_model), jnp.float32) * s
    gamma = jnp.ones((d_model,), jnp.float32)
    beta = jnp.zeros((d_model,), jnp.float32)

    out, attn = multi_head_attention(
        q_in, k_in, v_in, wq_t, wk_t, wv_t, wfc_t, gamma, beta,
        n_head=n_head, d_k=d_k, d_v=d_v)
    out = jax.block_until_ready(out)
    attn = jax.block_until_ready(attn)

    ref_out, ref_attn = _reference(
        q_in, k_in, v_in, wq_t, wk_t, wv_t, wfc_t, gamma, beta,
        n_head=n_head, d_k=d_k, d_v=d_v)

    assert out.shape == (batch, seq, d_model)
    assert attn.shape == (batch, n_head, seq, seq)
    # bf16 MXU operands (+ approx reciprocal) -> compare against f32 reference
    # with tolerances sized for bf16 matmul error.
    assert jnp.allclose(out, ref_out, atol=7e-2, rtol=7e-2), (
        float(jnp.max(jnp.abs(out - ref_out))))
    assert jnp.allclose(attn, ref_attn, atol=3e-2, rtol=3e-2), (
        float(jnp.max(jnp.abs(attn - ref_attn))))

    print("KERNEL_OK")
</pallas_src>

<mosaic_0001>
module attributes {stable_mosaic.version = 11 : i64} {
  func.func @_mha_kernel(%arg0: i32, %arg1: i32, %arg2: memref<1x8x32xf32, #tpu.memory_space<vmem>>, %arg3: memref<1x8x32xbf16, #tpu.memory_space<vmem>>, %arg4: memref<1x8x32xbf16, #tpu.memory_space<vmem>>, %arg5: memref<1x32x16xbf16, #tpu.memory_space<vmem>>, %arg6: memref<1x32x16xbf16, #tpu.memory_space<vmem>>, %arg7: memref<1x32x16xbf16, #tpu.memory_space<vmem>>, %arg8: memref<1x16x32xbf16, #tpu.memory_space<vmem>>, %arg9: memref<1x32xf32, #tpu.memory_space<vmem>>, %arg10: memref<1x32xf32, #tpu.memory_space<vmem>>, %arg11: memref<1x8x32xf32, #tpu.memory_space<vmem>>, %arg12: memref<1x1x8x8xf32, #tpu.memory_space<vmem>>, %arg13: memref<8x32xbf16, #tpu.memory_space<vmem>>) attributes {dimension_semantics = [#tpu.dimension_semantics<parallel>, #tpu.dimension_semantics<arbitrary>], iteration_bounds = array<i64: 2, 2>, scalar_prefetch = 0 : i64, scratch_operands = 1 : i64, tpu.core_type = #tpu.core_type<tc>, window_params = [{transform_indices = @transform_0, window_bounds = array<i64: 1, 8, 32>}, {transform_indices = @transform_1, window_bounds = array<i64: 1, 8, 32>}, {transform_indices = @transform_2, window_bounds = array<i64: 1, 8, 32>}, {transform_indices = @transform_3, window_bounds = array<i64: 1, 32, 16>}, {transform_indices = @transform_4, window_bounds = array<i64: 1, 32, 16>}, {transform_indices = @transform_5, window_bounds = array<i64: 1, 32, 16>}, {transform_indices = @transform_6, window_bounds = array<i64: 1, 16, 32>}, {pipeline_mode = #tpu.pipeline_mode<synchronous>, transform_indices = @transform_7, window_bounds = array<i64: 1, 32>}, {pipeline_mode = #tpu.pipeline_mode<synchronous>, transform_indices = @transform_8, window_bounds = array<i64: 1, 32>}, {transform_indices = @transform_9, window_bounds = array<i64: 1, 8, 32>}, {transform_indices = @transform_10, window_bounds = array<i64: 1, 1, 8, 8>}]} {
    %c0_i32 = arith.constant 0 : i32
    %0 = arith.cmpi eq, %arg1, %c0_i32 : i32
    %1 = arith.extui %0 : i1 to i32
    %c0_i32_0 = arith.constant 0 : i32
    %2 = arith.cmpi ne, %1, %c0_i32_0 : i32
    scf.if %2 {
      %c0_37 = arith.constant 0 : index
      %c0_38 = arith.constant 0 : index
      %c0_39 = arith.constant 0 : index
      %48 = vector.load %arg2[%c0_37, %c0_38, %c0_39] : memref<1x8x32xf32, #tpu.memory_space<vmem>>, vector<1x8x32xf32>
      %49 = vector.shape_cast %48 : vector<1x8x32xf32> to vector<8x32xf32>
      %cst_40 = arith.constant dense<0.000000e+00> : vector<8xf32>
      %50 = vector.multi_reduction <add>, %49, %cst_40 [1] : vector<8x32xf32> to vector<8xf32>
      %51 = vector.shape_cast %50 : vector<8xf32> to vector<8x1xf32>
      %cst_41 = arith.constant 3.200000e+01 : f32
      %52 = vector.broadcast %cst_41 : f32 to vector<8x1xf32>
      %53 = arith.divf %51, %52 : vector<8x1xf32>
      %54 = vector.broadcast %53 : vector<8x1xf32> to vector<8x32xf32>
      %55 = arith.subf %49, %54 : vector<8x32xf32>
      %56 = arith.mulf %55, %55 : vector<8x32xf32>
      %cst_42 = arith.constant dense<0.000000e+00> : vector<8xf32>
      %57 = vector.multi_reduction <add>, %56, %cst_42 [1] : vector<8x32xf32> to vector<8xf32>
      %58 = vector.shape_cast %57 : vector<8xf32> to vector<8x1xf32>
      %cst_43 = arith.constant 3.200000e+01 : f32
      %59 = vector.broadcast %cst_43 : f32 to vector<8x1xf32>
      %60 = arith.divf %58, %59 : vector<8x1xf32>
      %61 = vector.broadcast %53 : vector<8x1xf32> to vector<8x32xf32>
      %62 = arith.subf %49, %61 : vector<8x32xf32>
      %cst_44 = arith.constant 9.99999997E-7 : f32
      %63 = vector.broadcast %cst_44 : f32 to vector<8x1xf32>
      %64 = arith.addf %60, %63 : vector<8x1xf32>
      %65 = math.rsqrt %64 : vector<8x1xf32>
      %66 = vector.broadcast %65 : vector<8x1xf32> to vector<8x32xf32>
      %67 = arith.mulf %62, %66 : vector<8x32xf32>
      %c0_45 = arith.constant 0 : index
      %c0_46 = arith.constant 0 : index
      %68 = vector.load %arg9[%c0_45, %c0_46] : memref<1x32xf32, #tpu.memory_space<vmem>>, vector<1x32xf32>
      %69 = vector.broadcast %68 : vector<1x32xf32> to vector<8x32xf32>
      %70 = arith.mulf %67, %69 : vector<8x32xf32>
      %c0_47 = arith.constant 0 : index
      %c0_48 = arith.constant 0 : index
      %71 = vector.load %arg10[%c0_47, %c0_48] : memref<1x32xf32, #tpu.memory_space<vmem>>, vector<1x32xf32>
      %72 = vector.broadcast %71 : vector<1x32xf32> to vector<8x32xf32>
      %73 = arith.addf %70, %72 : vector<8x32xf32>
      %74 = arith.truncf %73 : vector<8x32xf32> to vector<8x32xbf16>
      %c0_49 = arith.constant 0 : index
      %c0_50 = arith.constant 0 : index
      %75 = vector.load %arg13[%c0_49, %c0_50] : memref<8x32xbf16, #tpu.memory_space<vmem>>, vector<8x32xbf16>
      tpu.vector_store %arg13[%c0_49, %c0_50], %74 {strides = array<i32>} : memref<8x32xbf16, #tpu.memory_space<vmem>>, vector<8x32xbf16>,
      %c0_51 = arith.constant 0 : index
      %c0_52 = arith.constant 0 : index
      %c0_53 = arith.constant 0 : index
      %76 = vector.load %arg11[%c0_51, %c0_52, %c0_53] : memref<1x8x32xf32, #tpu.memory_space<vmem>>, vector<1x8x32xf32>
      tpu.vector_store %arg11[%c0_51, %c0_52, %c0_53], %48 {strides = array<i32>} : memref<1x8x32xf32, #tpu.memory_space<vmem>>, vector<1x8x32xf32>,
    } else {
    }
    %c0 = arith.constant 0 : index
    %c0_1 = arith.constant 0 : index
    %c0_2 = arith.constant 0 : index
    %3 = vector.load %arg3[%c0, %c0_1, %c0_2] : memref<1x8x32xbf16, #tpu.memory_space<vmem>>, vector<1x8x32xbf16>
    %4 = vector.shape_cast %3 : vector<1x8x32xbf16> to vector<8x32xbf16>
    %c0_3 = arith.constant 0 : index
    %c0_4 = arith.constant 0 : index
    %c0_5 = arith.constant 0 : index
    %5 = vector.load %arg4[%c0_3, %c0_4, %c0_5] : memref<1x8x32xbf16, #tpu.memory_space<vmem>>, vector<1x8x32xbf16>
    %6 = vector.shape_cast %5 : vector<1x8x32xbf16> to vector<8x32xbf16>
    %c0_6 = arith.constant 0 : index
    %c0_7 = arith.constant 0 : index
    %7 = vector.load %arg13[%c0_6, %c0_7] : memref<8x32xbf16, #tpu.memory_space<vmem>>, vector<8x32xbf16>
    %c0_8 = arith.constant 0 : index
    %c0_9 = arith.constant 0 : index
    %c0_10 = arith.constant 0 : index
    %8 = vector.load %arg5[%c0_8, %c0_9, %c0_10] : memref<1x32x16xbf16, #tpu.memory_space<vmem>>, vector<1x32x16xbf16>
    %9 = vector.shape_cast %8 : vector<1x32x16xbf16> to vector<32x16xbf16>
    %cst = arith.constant dense<0.000000e+00> : vector<8x16xf32>
    %10 = tpu.matmul %7, %9, %cst {dimension_numbers = #tpu.dot_dimension_numbers<[1], [0], [0], [1], [0, 0, 1, 1], [], []>} : vector<8x32xbf16>, vector<32x16xbf16>, vector<8x16xf32> -> vector<8x16xf32>
    %c0_11 = arith.constant 0 : index
    %c0_12 = arith.constant 0 : index
    %c0_13 = arith.constant 0 : index
    %11 = vector.load %arg6[%c0_11, %c0_12, %c0_13] : memref<1x32x16xbf16, #tpu.memory_space<vmem>>, vector<1x32x16xbf16>
    %12 = vector.shape_cast %11 : vector<1x32x16xbf16> to vector<32x16xbf16>
    %cst_14 = arith.constant dense<0.000000e+00> : vector<8x16xf32>
    %13 = tpu.matmul %4, %12, %cst_14 {dimension_numbers = #tpu.dot_dimension_numbers<[1], [0], [0], [1], [0, 0, 1, 1], [], []>} : vector<8x32xbf16>, vector<32x16xbf16>, vector<8x16xf32> -> vector<8x16xf32>
    %c0_15 = arith.constant 0 : index
    %c0_16 = arith.constant 0 : index
    %c0_17 = arith.constant 0 : index
    %14 = vector.load %arg7[%c0_15, %c0_16, %c0_17] : memref<1x32x16xbf16, #tpu.memory_space<vmem>>, vector<1x32x16xbf16>
    %15 = vector.shape_cast %14 : vector<1x32x16xbf16> to vector<32x16xbf16>
    %cst_18 = arith.constant dense<0.000000e+00> : vector<8x16xf32>
    %16 = tpu.matmul %6, %15, %cst_18 {dimension_numbers = #tpu.dot_dimension_numbers<[1], [0], [0], [1], [0, 0, 1, 1], [], []>} : vector<8x32xbf16>, vector<32x16xbf16>, vector<8x16xf32> -> vector<8x16xf32>
    %17 = vector.shape_cast %10 : vector<8x16xf32> to vector<1x8x16xf32>
    %18 = arith.truncf %17 : vector<1x8x16xf32> to vector<1x8x16xbf16>
    %19 = vector.shape_cast %13 : vector<8x16xf32> to vector<1x8x16xf32>
    %20 = arith.truncf %19 : vector<1x8x16xf32> to vector<1x8x16xbf16>
    %21 = vector.shape_cast %16 : vector<8x16xf32> to vector<1x8x16xf32>
    %22 = arith.truncf %21 : vector<1x8x16xf32> to vector<1x8x16xbf16>
    "tpu.trace_start"() <{level = 10 : i32, message = "bqd,bkd->bqk"}> : () -> ()
    %cst_19 = arith.constant dense<0.000000e+00> : vector<1x8x8xf32>
    %23 = tpu.matmul %18, %20, %cst_19 {dimension_numbers = #tpu.dot_dimension_numbers<[2], [2], [1], [1], [0, 0, 0, 1, 1, 1], [0], [0]>} : vector<1x8x16xbf16>, vector<1x8x16xbf16>, vector<1x8x8xf32> -> vector<1x8x8xf32>
    "tpu.trace_stop"() : () -> ()
    %cst_20 = arith.constant dense<0xFF800000> : vector<1x8xf32>
    %24 = vector.multi_reduction <maximumf>, %23, %cst_20 [2] : vector<1x8x8xf32> to vector<1x8xf32>
    %25 = vector.shape_cast %24 : vector<1x8xf32> to vector<1x8x1xf32>
    %26 = vector.broadcast %25 : vector<1x8x1xf32> to vector<1x8x8xf32>
    %27 = arith.subf %23, %26 : vector<1x8x8xf32>
    %28 = math.exp %27 : vector<1x8x8xf32>
    %cst_21 = arith.constant dense<0.000000e+00> : vector<1x8xf32>
    %29 = vector.multi_reduction <add>, %28, %cst_21 [2] : vector<1x8x8xf32> to vector<1x8xf32>
    %30 = vector.shape_cast %29 : vector<1x8xf32> to vector<1x8x1xf32>
    %31 = tpu.reciprocal %30 {approx = true} : vector<1x8x1xf32> -> vector<1x8x1xf32>
    %32 = vector.broadcast %31 : vector<1x8x1xf32> to vector<1x8x8xf32>
    %33 = arith.mulf %28, %32 : vector<1x8x8xf32>
    %c0_22 = arith.constant 0 : index
    %c0_23 = arith.constant 0 : index
    %c0_24 = arith.constant 0 : index
    %c0_25 = arith.constant 0 : index
    %34 = vector.load %arg12[%c0_22, %c0_23, %c0_24, %c0_25] : memref<1x1x8x8xf32, #tpu.memory_space<vmem>>, vector<1x1x8x8xf32>
    %35 = vector.shape_cast %34 : vector<1x1x8x8xf32> to vector<1x8x8xf32>
    %36 = vector.shape_cast %33 : vector<1x8x8xf32> to vector<1x1x8x8xf32>
    tpu.vector_store %arg12[%c0_22, %c0_23, %c0_24, %c0_25], %36 {strides = array<i32>} : memref<1x1x8x8xf32, #tpu.memory_space<vmem>>, vector<1x1x8x8xf32>,
    %37 = arith.truncf %33 : vector<1x8x8xf32> to vector<1x8x8xbf16>
    "tpu.trace_start"() <{level = 10 : i32, message = "bqk,bkd->bqd"}> : () -> ()
    %cst_26 = arith.constant dense<0.000000e+00> : vector<1x8x16xf32>
    %38 = tpu.matmul %37, %22, %cst_26 {dimension_numbers = #tpu.dot_dimension_numbers<[2], [1], [1], [2], [0, 0, 0, 1, 1, 2], [0], [0]>} : vector<1x8x8xbf16>, vector<1x8x16xbf16>, vector<1x8x16xf32> -> vector<1x8x16xf32>
    "tpu.trace_stop"() : () -> ()
    %39 = vector.shape_cast %38 : vector<1x8x16xf32> to vector<8x16xf32>
    %40 = arith.truncf %39 : vector<8x16xf32> to vector<8x16xbf16>
    %c0_27 = arith.constant 0 : index
    %c0_28 = arith.constant 0 : index
    %c0_29 = arith.constant 0 : index
    %41 = vector.load %arg8[%c0_27, %c0_28, %c0_29] : memref<1x16x32xbf16, #tpu.memory_space<vmem>>, vector<1x16x32xbf16>
    %42 = vector.shape_cast %41 : vector<1x16x32xbf16> to vector<16x32xbf16>
    %cst_30 = arith.constant dense<0.000000e+00> : vector<8x32xf32>
    %43 = tpu.matmul %40, %42, %cst_30 {dimension_numbers = #tpu.dot_dimension_numbers<[1], [0], [0], [1], [0, 0, 1, 1], [], []>} : vector<8x16xbf16>, vector<16x32xbf16>, vector<8x32xf32> -> vector<8x32xf32>
    %c0_31 = arith.constant 0 : index
    %c0_32 = arith.constant 0 : index
    %c0_33 = arith.constant 0 : index
    %44 = vector.load %arg11[%c0_31, %c0_32, %c0_33] : memref<1x8x32xf32, #tpu.memory_space<vmem>>, vector<1x8x32xf32>
    %45 = vector.shape_cast %43 : vector<8x32xf32> to vector<1x8x32xf32>
    %46 = arith.addf %44, %45 : vector<1x8x32xf32>
    %c0_34 = arith.constant 0 : index
    %c0_35 = arith.constant 0 : index
    %c0_36 = arith.constant 0 : index
    %47 = vector.load %arg11[%c0_34, %c0_35, %c0_36] : memref<1x8x32xf32, #tpu.memory_space<vmem>>, vector<1x8x32xf32>
    tpu.vector_store %arg11[%c0_34, %c0_35, %c0_36], %46 {strides = array<i32>} : memref<1x8x32xf32, #tpu.memory_space<vmem>>, vector<1x8x32xf32>,
    return
  }
  func.func @transform_0(%arg0: i32, %arg1: i32) -> (i32, i32, i32) {
    %c0_i32 = arith.constant 0 : i32
    %c0_i32_0 = arith.constant 0 : i32
    %c0_i32_1 = arith.constant 0 : i32
    return %arg0, %c0_i32, %c0_i32_0 : i32, i32, i32
  }
  func.func @transform_1(%arg0: i32, %arg1: i32) -> (i32, i32, i32) {
    %c0_i32 = arith.constant 0 : i32
    %c0_i32_0 = arith.constant 0 : i32
    %c0_i32_1 = arith.constant 0 : i32
    return %arg0, %c0_i32, %c0_i32_0 : i32, i32, i32
  }
  func.func @transform_2(%arg0: i32, %arg1: i32) -> (i32, i32, i32) {
    %c0_i32 = arith.constant 0 : i32
    %c0_i32_0 = arith.constant 0 : i32
    %c0_i32_1 = arith.constant 0 : i32
    return %arg0, %c0_i32, %c0_i32_0 : i32, i32, i32
  }
  func.func @transform_3(%arg0: i32, %arg1: i32) -> (i32, i32, i32) {
    %c0_i32 = arith.constant 0 : i32
    %c0_i32_0 = arith.constant 0 : i32
    %c0_i32_1 = arith.constant 0 : i32
    return %arg1, %c0_i32, %c0_i32_0 : i32, i32, i32
  }
  func.func @transform_4(%arg0: i32, %arg1: i32) -> (i32, i32, i32) {
    %c0_i32 = arith.constant 0 : i32
    %c0_i32_0 = arith.constant 0 : i32
    %c0_i32_1 = arith.constant 0 : i32
    return %arg1, %c0_i32, %c0_i32_0 : i32, i32, i32
  }
  func.func @transform_5(%arg0: i32, %arg1: i32) -> (i32, i32, i32) {
    %c0_i32 = arith.constant 0 : i32
    %c0_i32_0 = arith.constant 0 : i32
    %c0_i32_1 = arith.constant 0 : i32
    return %arg1, %c0_i32, %c0_i32_0 : i32, i32, i32
  }
  func.func @transform_6(%arg0: i32, %arg1: i32) -> (i32, i32, i32) {
    %c0_i32 = arith.constant 0 : i32
    %c0_i32_0 = arith.constant 0 : i32
    %c0_i32_1 = arith.constant 0 : i32
    return %arg1, %c0_i32, %c0_i32_0 : i32, i32, i32
  }
  func.func @transform_7(%arg0: i32, %arg1: i32) -> (i32, i32) {
    %c0_i32 = arith.constant 0 : i32
    %c0_i32_0 = arith.constant 0 : i32
    %c0_i32_1 = arith.constant 0 : i32
    return %c0_i32, %c0_i32_0 : i32, i32
  }
  func.func @transform_8(%arg0: i32, %arg1: i32) -> (i32, i32) {
    %c0_i32 = arith.constant 0 : i32
    %c0_i32_0 = arith.constant 0 : i32
    %c0_i32_1 = arith.constant 0 : i32
    return %c0_i32, %c0_i32_0 : i32, i32
  }
  func.func @transform_9(%arg0: i32, %arg1: i32) -> (i32, i32, i32) {
    %c0_i32 = arith.constant 0 : i32
    %c0_i32_0 = arith.constant 0 : i32
    %c0_i32_1 = arith.constant 0 : i32
    return %arg0, %c0_i32, %c0_i32_0 : i32, i32, i32
  }
  func.func @transform_10(%arg0: i32, %arg1: i32) -> (i32, i32, i32, i32) {
    %c0_i32 = arith.constant 0 : i32
    %c0_i32_0 = arith.constant 0 : i32
    %c0_i32_1 = arith.constant 0 : i32
    return %arg0, %arg1, %c0_i32, %c0_i32_0 : i32, i32, i32, i32
  }
}

</mosaic_0001>

<bundles_post_ra>
// kernel: tpu_custom_call.1
= control target key start
LH: loop header
LB: loop body
LE: loop exit
PB: predicated region body
PF: predicated region fallthrough
CT: control target
= control target key end

     0   :  { %s1812_s0 = inlined_call_operand.vmem [shape: f32[2,8,32], index: 0, kind: input, shape index: {}]   ;;  %s1813_s1 = inlined_call_operand.vmem [shape: bf16[2,8,32], index: 1, kind: input, shape index: {}]   ;;  %s1814_s2 = inlined_call_operand.vmem [shape: bf16[2,8,32], index: 2, kind: input, shape index: {}]   ;;  %s1815_s3 = inlined_call_operand.vmem [shape: bf16[2,32,16], index: 3, kind: input, shape index: {}]   ;;  %s1816_s4 = inlined_call_operand.vmem [shape: bf16[2,32,16], index: 4, kind: input, shape index: {}]   ;;  %s1817_s5 = inlined_call_operand.vmem [shape: bf16[2,32,16], index: 5, kind: input, shape index: {}]   ;;  %s1818_s6 = inlined_call_operand.vmem [shape: bf16[2,16,32], index: 6, kind: input, shape index: {}]   ;;  %s1819_s7 = inlined_call_operand.vmem [shape: f32[1,32], index: 7, kind: input, shape index: {}]   ;;  %s1820_s8 = inlined_call_operand.vmem [shape: f32[1,32], index: 8, kind: input, shape index: {}]   ;;  %s1821_s9 = inlined_call_operand.hbm [shape: f32[2,8,32], index: 9, kind: output, shape index: {0}]   ;;  %s1822_s10 = inlined_call_operand.hbm [shape: f32[2,2,8,8], index: 10, kind: output, shape index: {1}]  }
   0x1   :  { %1845 = sst [smem:[#allocation26_spill]] %s1812_s0 }
   0x2   :  { %1846 = sst [smem:[#allocation27_spill]] %s1821_s9 }
   0x3   :  { %1847 = sst [smem:[#allocation28_spill]] %s1822_s10 }
   0x4   :  { %16 = vsyncpa [#allocation4], 0 }
   0x5   :  { %18 = vsyncpa [#allocation4 + $0x1], 0 }
   0x6   :  { %19 = vsyncpa [#allocation6], 0 }
   0x7   :  { %21 = vsyncpa [#allocation6 + $0x1], 0  ;;  %s1516_s13 = smov 0   ;;  %s1518_s14 = smov 0  }
   0x8   :  { %s1520_s15 = smov 0   ;;  %s1522_s16 = smov 0  }
   0x9   :  { %s1524_s17 = smov 0   ;;  %s1526_s18 = smov 0  }
   0xa   :  { %s1528_s19 = smov 0   ;;  %s1530_s20 = smov 0  }
   0xb   :  { %s1532_s21 = smov 0   ;;  %s1534_s22 = smov 0  }
   0xc   :  { %s1536_s23 = smov 0  }
   0xd LB: > { %1848 = sst [smem:[#allocation9_spill]] %s1415_s13  ;;  %s1092_s24 = sadd.s32 4294967295, %s1455_s23   ;;  %s1455_s23 = sphi %s1536_s23, %s27_s23   ;;  %s1451_s22 = sphi %s1534_s22, %s1898_s22   ;;  %s1447_s21 = sphi %s1532_s21, %s1897_s21   ;;  %s1443_s20 = sphi %s1530_s20, %s1896_s20   ;;  %s1439_s19 = sphi %s1528_s19, %s1895_s19   ;;  %s1435_s18 = sphi %s1526_s18, %s1894_s18   ;;  %s1431_s17 = sphi %s1524_s17, %s1893_s17   ;;  %s1427_s16 = sphi %s1522_s16, %s1892_s16   ;;  %s1423_s15 = sphi %s1520_s15, %s1891_s15   ;;  %s1419_s14 = sphi %s1518_s14, %s1890_s14   ;;  %s1415_s13 = sphi %s1516_s13, %s1889_s13  }
   0xe   : > { %1849 = sst [smem:[#allocation10_spill]] %s1419_s14  ;;  %s1093_s25 = sadd.s32 4294967294, %s1455_s23  }
   0xf   : > { %1850 = sst [smem:[#allocation11_spill]] %s1423_s15  ;;  %s36_s26 = sadd.s32 1, %s1447_s21 }
  0x10   : > { %1851 = sst [smem:[#allocation12_spill]] %s1427_s16  ;;  %s39_s27 = sadd.s32 1, %s1451_s22 }
  0x11   : > { %1852 = sst [smem:[#allocation13_spill]] %s1431_s17  ;;  %p37_p0 = scmp.ge.s32.totalorder %s36_s26, 2 }
  0x12   : > { %1853 = sst [smem:[#allocation14_spill]] %s1435_s18  ;;  %s270_s28 = sadd.s32 1, %s1435_s18 }
  0x13   : > { %1854 = sst [smem:[#allocation15_spill]] %s1447_s21  ;;  %p280_p1 = scmp.ne.s32.totalorder %s1435_s18, %s1431_s17 }
  0x14   : > { %1855 = sst [smem:[#allocation16_spill]] %s1451_s22  ;;  %p1578_p2 = scmp.eq.s32.totalorder %s1092_s24, 3 }
  0x15   : > { %1856 = sst [smem:[#allocation17_spill]] %s1455_s23  ;;  %s1900_s26 = smov (%p37_p0, %s36_s26), 0 }
  0x16   : > { %1858 = sst [smem:[#allocation18_spill]] %s1900_s26  ;;  %s1902_s27 = smov (!%p37_p0, %s39_s27), %s1451_s22 }
  0x17   : > { %p1587_p3 = por %p1578_p2, %p280_p1  ;;  %p286_p4 = scmp.ne.s32.totalorder %s1431_s17, %s1427_s16 }
  0x18   : > { %p41_p5 = scmp.ge.s32.totalorder %s1902_s27, 2  ;;  %p1593_p6 = scmp.eq.s32.totalorder %s1093_s25, 3 }
  0x19   : > { %s1859_s30 = scalar_select %p1587_p3, 1, 0 }
  0x1a   : > { %s294_s12 = ssub.s32 %s1447_s21, %s1900_s26  ;;  %s298_s24 = sadd.s32 1, %s1423_s15 }
  0x1b   : > { %1860 = sst [smem:[#allocation19_spill]] %s1859_s30  ;;  %s1904_s27 = smov (%p41_p5, %s1902_s27), 0 }
  0x1c   : > { %1862 = sst [smem:[#allocation20_spill]] %s1904_s27  ;;  %p1604_p7 = por %p1593_p6, %p286_p4 }
  0x1d   : > { %p308_p8 = scmp.ne.s32.totalorder %s1423_s15, %s1419_s14  ;;  %s267_s16 = ssub.s32 %s1451_s22, %s1904_s27 }
  0x1e   : > { %s1863_s9 = scalar_select %p1604_p7, 1, 0 }
  0x1f   : > { %p314_p9 = scmp.ne.s32.totalorder %s1419_s14, %s1415_s13  ;;  %p268_p10 = scmp.eq.s32.totalorder %s267_s16, 0 }
  0x20   : > { %1864 = sst [smem:[#allocation21_spill]] %s1863_s9  ;;  %s295_s25 = sor.u32 %s294_s12, %s267_s16 }
  0x21   : > { %p296_p11 = scmp.eq.s32.totalorder %s295_s25, 0  ;;  %p1616_p12 = por %p308_p8, %p1578_p2 }
  0x22   : > { %s1621_s26 = scalar_select %p268_p10, %s1435_s18, %s270_s28  }
  0x23   : > { %s1865_s30 = scalar_select %p1616_p12, 1, 0 }
  0x24   : > { %1867 = sst [smem:[#allocation23_spill]] %s1621_s26  ;;  %p1628_p13 = por %p314_p9, %p1593_p6 }
  0x25   : > { %1866 = sst [smem:[#allocation22_spill]] %s1865_s30  ;;  %p1096_p0 = scmp.ge.s32.totalorder %s1455_s23, 1 }
  0x26   : > { %s1624_s21 = scalar_select %p296_p11, %s1423_s15, %s298_s24  }
  0x27   : > { %s1869_s10 = scalar_select %p1628_p13, 1, 0 }
  0x28   : > { %1868 = sst [smem:[#allocation24_spill]] %s1624_s21  ;;  %p392_p1 = scmp.lt.s32.totalorder %s1455_s23, 5 }
  0x29   : > { %1870 = sst [smem:[#allocation25_spill]] %s1869_s10 }
  0x2a   : > { %p393_p4 = pnand %p1096_p0, %p392_p1 }
  0x2b   : > { %s1835_s16 = sand.u32 (!%p393_p4), 1, %s1431_s17   ;;  %s1837_s28 = sand.u32 (!%p393_p4), 1, %s1419_s14  }
  0x2c   : > { %396 = sbr.rel (%p393_p4) target bundleno = 1497 (0x5d9), region = 56  ;;  %s1097_s29 = sshll.u32 (!%p393_p4), %s1835_s16, 3 }
  0x2d   : > { %s1640_s11 = sshll.u32 (!%p393_p4), %s1837_s28, 3  ;;  %p462_p2 = scmp.lt.s32.totalorder (!%p393_p4), %s1443_s20, 1 }
  0x2e   : > { %p474_p5 = scmp.lt.s32.totalorder (!%p393_p4), %s1439_s19, 1  ;;  %s1871_s0 = sld [smem:[#allocation26_spill]] (!%p393_p4) }
  0x2f   : > { %s461_s17 = scalar_lea.vmem (!%p393_p4), [#allocation5], %s1640_s11  ;;  %p1110_p6 = scmp.ne.s32.totalorder (!%p393_p4), %s1439_s19, 0 }
  0x31   : > { %s463_s12 = scalar_select %p462_p2, %s1443_s20, 1 }
  0x32   : > { %s475_s24 = scalar_select %p474_p5, %s1439_s19, 1 }
  0x33   : > { %s1099_s25 = sshll.u32 %s463_s12, 3  ;;  %s1100_s27 = sshll.u32 %s463_s12, 2 }
  0x34   : > { %s465_s18 = scalar_lea.vmem %s1871_s0, %s1099_s25  ;;  %s1652_s10 = scalar_lea.vmem %s1813_s1, %s1100_s27 }
  0x35   : > { %s1657_s28 = scalar_lea.vmem %s1814_s2, %s1100_s27  ;;  %s1133_s9 = sshll.u32 %s475_s24, 4 }
  0x36   : > { %s1662_s30 = scalar_lea.vmem %s1815_s3, %s1133_s9  ;;  %s1667_s22 = scalar_lea.vmem %s1816_s4, %s1133_s9 }
  0x37   : > { %s1672_s21 = scalar_lea.vmem %s1817_s5, %s1133_s9  ;;  %s1136_s25 = sshll.u32 %s475_s24, 3 }
  0x38   : > { %s1677_s16 = scalar_lea.vmem %s1818_s6, %s1136_s25  ;;  %s1679_s0 = scalar_lea.vmem [#allocation3], %s1097_s29 }
  0x39   : > { %498 = sbr.rel (%p1110_p6) target bundleno = 374 (0x176), region = 60 }
  0x3e   : > { %v499_v0 = vld [vmem:[%s465_s18] sm:$0xff]  ;;  %vm500_vm0 = vcmask 261120   ;;  %vm532_vm1 = vcmask 257024  }
  0x3f   : > { %v501_v1 = vsel %vm500_vm0, %v499_v0, 0.0  ;;  %534 = vst.msk [vmem:[%s1679_s0] sm:$0xff] %vm500_vm0, %v499_v0  ;;  %v1111_v11 = vld [vmem:[%s1819_s7] ss:$0 sm:$0xff] }
  0x40   : > { %502 = vadd.xlane.f32.xlu0 %v501_v1  ;;  %v1112_v13 = vld [vmem:[%s1820_s8] ss:$0 sm:$0xff] }
  0xc9   : > { %v503_v2 = vpop.xlane.xlu0 %502 }
  0xca   : > { %v505_v3 = vmul.f32 0.03125, %v503_v2 }
  0xcc   : > { %v506_v4 = vsub.f32 %v499_v0, %v505_v3 }
  0xce   : > { %v507_v5 = vmul.f32 %v506_v4, %v506_v4 }
  0xd0   : > { %v508_v6 = vsel %vm500_vm0, %v507_v5, 0.0 }
  0xd1   : > { %509 = vadd.xlane.f32.xlu0 %v508_v6 }
 0x15a   : > { %v510_v7 = vpop.xlane.xlu0 %509 }
 0x15b   : > { %v511_v8 = vmul.f32 0.03125, %v510_v7 }
 0x15d   : > { %v512_v9 = vadd.f32 1e-06, %v511_v8 }
 0x15f   : > { %1296 = vrsqrt.f32 %v512_v9 }
 0x16c   : > { %v1297_v10 = vpop.eup %1296 }
 0x16d   : > { %v514_v12 = vmul.f32 %v1297_v10, %v506_v4 }
 0x16f   : > { %v522_v14 = vmul.f32 %v1111_v11, %v514_v12 }
 0x171   : > { %v530_v15 = vadd.f32 %v1112_v13, %v522_v14 }
 0x173   : > { %v531_v16 = vpack.c.bf16 %v530_v15, %v530_v15 }
 0x175   : > { %533 = vst.msk [vmem:[#allocation2] sm:$0xf] %vm532_vm1, %v531_v16 }
 0x176 PF: > { %v1298_v17 = vld [vmem:[%s1667_s22 + $0x8] sm:$0xff]   ;;  %v1457_v18 = vmov 0.0   ;;  %v1300_v20 = vld [vmem:[%s1667_s22] sm:$0xff]   ;;  %vm1458_vm2 = vmmov 0   ;;  %vm554_vm3 = vcmask 261120   ;;  %vm719_vm4 = vcmask 130048  }
 0x177   : > { %1160 = vmatprep.subr.bf16.mxu1 %v1457_v18  ;;  %1152 = vmatprep.subr.bf16.mxu0 %v1457_v18  ;;  %v1299_v19 = vld [vmem:[%s1662_s30 + $0x8] sm:$0xff]   ;;  %v1301_v21 = vld [vmem:[%s1662_s30] sm:$0xff]   ;;  %vm766_vm5 = vcmask 64512   ;;  %vm783_vm6 = vcmask 1043456   ;;  %s916_s12 = sshll.u32 %s461_s17, 4  ;;  %s1874_s15 = sld [smem:[#allocation28_spill]]  ;;  %s917_s12 = int_to_ptr.vmem [resolvable:$true] %s916_s12 }
 0x178   : > { %1161 = vmatpush3.bf16.msra.mxu1 %v1298_v17  ;;  %1164 = vmatprep.mubr.msk.bf16.mxu1 %vm1458_vm2, %v1457_v18  ;;  %v535_v22 = vld [vmem:[%s1652_s10] sm:$0xf]  ;;  %v1302_v35 = vld [vmem:[%s1672_s21 + $0x8] sm:$0xff]   ;;  %s1872_s10 = sld [smem:[#allocation10_spill]]  ;;  %s1459_s9 = smov [#allocation5]  }
 0x179   : > { %1153 = vmatpush3.bf16.msra.mxu0 %v1299_v19  ;;  %1162 = vmatprep.subr.bf16.mxu1 %v1457_v18  ;;  %v1303_v36 = vld [vmem:[%s1672_s21] sm:$0xff]   ;;  %s1313_s14 = sshll.u32 %s1459_s9, 4  ;;  %s1314_s14 = int_to_ptr.vmem [resolvable:$false] %s1313_s14 }
 0x17a   : > { %1154 = vmatprep.subr.bf16.mxu0 %v1457_v18  ;;  %1156 = vmatprep.mubr.msk.bf16.mxu0 %vm1458_vm2, %v1457_v18  ;;  %v536_v37 = vld [vmem:[%s1657_s28] sm:$0xf]  ;;  %s1129_s28 = sshll.u32 %s1443_s20, 1  ;;  %s1315_s18 = scalar_lea.vmem %s1314_s14, 256 }
 0x17b   : > { %v1304_v54 = vld [vmem:[%s1677_s16] sm:$0xff]   ;;  %s912_s29 = sadd.s32 %s1439_s19, %s1129_s28  ;;  %s1309_s16 = scalar_lea.vmem %s917_s12, 128 }
 0x17c   : > { %1163 = vmatpush3.bf16.msra.mxu1 %v1300_v20  ;;  %v537_v23 = vld [vmem:[#allocation2] sm:$0xf]  ;;  %s1130_s24 = sshll.u32 %s912_s29, 7  ;;  %p1310_p8 = scmp.ne.s32.totalorder %s917_s12, %s1309_s16 }
 0x17d   : > { %1155 = vmatpush3.bf16.msra.mxu0 %v1301_v21  ;;  %1176 = vmatprep.subr.bf16.mxu1 %v1457_v18  ;;  %s1875_s25 = smov %s1874_s15  ;;  %s914_s21 = scalar_lea.hbm %s1874_s15, %s1130_s24 }
 0x17e   : > { %1168 = vmatprep.subr.bf16.mxu0 %v1457_v18  ;;  %s1876_s13 = sand.u32 1, %s1872_s10   ;;  %p1311_p9 = pnand %p1310_p8, %p1616_p12 }
 0x17f   : > { %1165 = vmatmul.mubr.msk.bf16.vlgmr.msra.gmra.mxu1 %vm554_vm3, %v535_v22  ;;  %s888_s27 = scalar_lea.sflag [#allocation6], %s1876_s13  ;;  %p1316_p11 = scmp.lt.s32.totalorder %s917_s12, %s1314_s14 }
 0x180   : > { %1157 = vmatmul.mubr.msk.bf16.vlgmr.msra.gmra.mxu0 %vm554_vm3, %v537_v23  ;;  %1178 = vmatprep.mubr.msk.bf16.mxu1 %vm1458_vm2, %v1457_v18  ;;  %p1312_p10 = pneg %p1311_p9  ;;  %p1317_p0 = scmp.lt.s32.totalorder %s1315_s18, %s1309_s16 }
 0x181   : > { %1172 = vmatprep.mubr.msk.bf16.mxu0 %vm1458_vm2, %v1457_v18  ;;  %1169 = vmatpush3.bf16.msra.mxu0 %v1302_v35 }
 0x182   : > { %1170 = vmatprep.subr.bf16.mxu0 %v1457_v18  ;;  %p1318_p1 = por %p1317_p0, %p1316_p11 }
 0x184   : > { %p1319_p4 = pnand %p1318_p1, %p1312_p10 }
 0x185   : > { %1171 = vmatpush3.bf16.msra.mxu0 %v1303_v36 }
 0x186   : > { %1182 = vmatprep.subr.bf16.mxu0 %v1457_v18 }
 0x188   : > { %1173 = vmatmul.mubr.msk.bf16.vlgmr.msra.gmra.mxu0 %vm554_vm3, %v536_v37 }
 0x189   : > { %1184 = vmatprep.mubr.msk.bf16.mxu0 %vm1458_vm2, %v1457_v18 }
 0x23f   : > { %v651_v24 = vpop.f32.mrf.mxu1 }
 0x240   : > { %v717_v25 = vpack.c.bf16 %v651_v24, %v651_v24  ;;  %v592_v26 = vpop.f32.mrf.mxu0 }
 0x241   : > { %v1166_v27 = vpop.f32.mrf.mxu1  ;;  %v716_v33 = vpack.c.bf16 %v592_v26, %v592_v26 }
 0x242   : > { %v724_v28 = vsel %vm719_vm4, %v717_v25, 0  ;;  %v1158_v29 = vpop.f32.mrf.mxu0 }
 0x243   : > { %v654_v30 = vpop.f32.mrf.mxu1  ;;  %1177 = vmatpush3.bf16.xpose.msra.mxu1 %v724_v28 }
 0x244   : > { %v595_v31 = vpop.f32.mrf.mxu0  ;;  %1188 = vmatprep.subr.bf16.mxu1 %v1457_v18 }
 0x245   : > { %v1167_v32 = vpop.f32.mrf.mxu1 }
 0x246   : > { %v1159_v34 = vpop.f32.mrf.mxu0 }
 0x248   : > { %v710_v48 = vpop.f32.mrf.mxu0 }
 0x249   : > { %v718_v52 = vpack.c.bf16 %v710_v48, %v710_v48 }
 0x24a   : > { %1179 = vmatmul.mubr.msk.bf16.vlgmr.msra.gmra.mxu1 %vm719_vm4, %v716_v33  ;;  %v1174_v49 = vpop.f32.mrf.mxu0 }
 0x24b   : > { %1190 = vmatprep.mubr.msk.bf16.mxu1 %vm1458_vm2, %v1457_v18  ;;  %v785_v53 = vsel %vm783_vm6, %v718_v52, 0  ;;  %1189 = vmatpush3.bf16.msra.mxu1 %v1304_v54 }
 0x24c   : > { %v713_v50 = vpop.f32.mrf.mxu0  ;;  %1183 = vmatpush3.bf16.msra.mxu0 %v785_v53 }
 0x24e   : > { %v1175_v51 = vpop.f32.mrf.mxu0 }
 0x30a   : > { %v760_v38 = vpop.f32.mrf.mxu1 }
 0x30b   : > { %v767_v39 = vsel %vm766_vm5, %v760_v38, -inf }
 0x30c   : > { %768 = vmax.xlane.f32.xlu0 %v767_v39  ;;  %v1180_v40 = vpop.f32.mrf.mxu1 }
 0x30e   : > { %v763_v41 = vpop.f32.mrf.mxu1 }
 0x310   : > { %v1181_v42 = vpop.f32.mrf.mxu1 }
 0x395   : > { %v769_v43 = vpop.xlane.xlu0 %768 }
 0x396   : > { %v770_v44 = vsub.f32 %v760_v38, %v769_v43 }
 0x398   : > { %v771_v45 = vmul.f32 1.442695, %v770_v44 }
 0x39a   : > { %1305 = vpow2.f32 %v771_v45 }
 0x3a7   : > { %v1306_v46 = vpop.eup %1305 }
 0x3a8   : > { %v773_v47 = vsel %vm766_vm5, %v1306_v46, 0.0 }
 0x3a9   : > { %774 = vadd.xlane.f32.xlu0 %v773_v47 }
 0x432   : > { %v775_v55 = vpop.xlane.xlu0 %774 }
 0x433   : > { %1307 = vrcp.f32 %v775_v55 }
 0x440   : > { %v1308_v56 = vpop.eup %1307 }
 0x441   : > { %v777_v57 = vmul.f32 %v1308_v56, %v1306_v46 }
 0x443   : > { %778 = vst.msk [vmem:[%s461_s17] sm:$0xff] %vm766_vm5, %v777_v57  ;;  %v779_v58 = vpack.c.bf16 %v777_v57, %v777_v57 }
 0x445   : > { %1185 = vmatmul.mubr.msk.bf16.vlgmr.msra.gmra.mxu0 %vm766_vm5, %v779_v58 }
 0x505   : > { %v821_v59 = vpop.f32.mrf.mxu0 }
 0x506   : > { %v827_v60 = vpack.c.bf16 %v821_v59, %v821_v59 }
 0x507   : > { %v1186_v61 = vpop.f32.mrf.mxu0 }
 0x508   : > { %1191 = vmatmul.mubr.msk.bf16.vlgmr.msra.gmra.mxu1 %vm719_vm4, %v827_v60 }
 0x509   : > { %v824_v62 = vpop.f32.mrf.mxu0 }
 0x50b   : > { %v1187_v63 = vpop.f32.mrf.mxu0 }
 0x50c   : > { %1322 = shalt.err (!%p1319_p4)
}
 0x50d   : > { %s1323_s19 = scalar_lea.hbm %s914_s21, 128  ;;  %s1327_s23 = scalar_lea.hbm %s1875_s25, 512 }
 0x50e   : > { %p1324_p2 = scmp.ne.s32.totalorder %s914_s21, %s1323_s19  ;;  %p1328_p8 = scmp.lt.s32.totalorder %s914_s21, %s1875_s25 }
 0x50f   : > { %p1329_p9 = scmp.lt.s32.totalorder %s1327_s23, %s1323_s19 }
 0x510   : > { %p1325_p5 = pnand %p1324_p2, %p1616_p12 }
 0x511   : > { %p1330_p13 = por %p1329_p9, %p1328_p8 }
 0x512   : > { %p1326_p6 = pneg %p1325_p5 }
 0x514   : > { %p1331_p7 = pnand %p1330_p13, %p1326_p6 }
 0x516   : > { %1334 = shalt.err (!%p1331_p7)
}
 0x517   : > { %s1877_s29 = sld [smem:[#allocation13_spill]]  ;;  %v879_v0 = vld [vmem:[%s1679_s0] sm:$0xff]  ;;  %s1128_s22 = sshll.u32 %s1443_s20, 7 }
 0x518   : > { %1195 = dma.vmem_to_hbm [thread:$0]  (%p1616_p12), %s917_s12, 128, %s914_s21, %s888_s27  }
 0x519   : > { %s901_s26 = sshll.u32 %s1679_s0, 4  ;;  %s1879_s16 = sld [smem:[#allocation27_spill]]  ;;  %s1746_s26 = int_to_ptr.vmem [resolvable:$true] %s901_s26 }
 0x51a   : > { %s1335_s20 = scalar_lea.vmem %s1746_s26, 128  ;;  %s1460_s21 = smov [#allocation3]  }
 0x51b   : > { %p1336_p7 = scmp.ne.s32.totalorder %s1746_s26, %s1335_s20  ;;  %s1339_s27 = sshll.u32 %s1460_s21, 4  ;;  %s1340_s27 = int_to_ptr.vmem [resolvable:$false] %s1339_s27 }
 0x51c   : > { %s1341_s18 = scalar_lea.vmem %s1340_s27, 256  ;;  %p1342_p10 = scmp.lt.s32.totalorder %s1746_s26, %s1340_s27 }
 0x51d   : > { %s1881_s30 = sand.u32 1, %s1877_s29   ;;  %p1337_p12 = pnand %p1336_p7, %p1587_p3 }
 0x51e   : > { %s883_s12 = scalar_lea.sflag [#allocation4], %s1881_s30  ;;  %p1343_p11 = scmp.lt.s32.totalorder %s1341_s18, %s1335_s20 }
 0x51f   : > { %s1880_s9 = smov %s1879_s16  ;;  %s1744_s14 = scalar_lea.hbm %s1879_s16, %s1128_s22 }
 0x520   : > { %p1338_p13 = pneg %p1337_p12  ;;  %p1344_p0 = por %p1343_p11, %p1342_p10 }
 0x522   : > { %p1345_p1 = pnand %p1344_p0, %p1338_p13 }
 0x5c8   : > { %v873_v1 = vpop.f32.mrf.mxu1 }
 0x5c9   : > { %v880_v2 = vadd.f32 %v879_v0, %v873_v1 }
 0x5ca   : > { %v1192_v3 = vpop.f32.mrf.mxu1 }
 0x5cb   : > { %881 = vst.msk [vmem:[%s1679_s0] sm:$0xff] %vm554_vm3, %v880_v2 }
 0x5cc   : > { %v876_v4 = vpop.f32.mrf.mxu1 }
 0x5cd   : > { %1348 = shalt.err (!%p1345_p1)
}
 0x5ce   : > { %s1349_s0 = scalar_lea.hbm %s1744_s14, 128  ;;  %s1353_s17 = scalar_lea.hbm %s1880_s9, 256 }
 0x5cf   : > { %p1350_p4 = scmp.ne.s32.totalorder %s1744_s14, %s1349_s0  ;;  %p1354_p6 = scmp.lt.s32.totalorder %s1744_s14, %s1880_s9 }
 0x5d0   : > { %p1355_p8 = scmp.lt.s32.totalorder %s1353_s17, %s1349_s0 }
 0x5d1   : > { %p1351_p2 = pnand %p1350_p4, %p1587_p3 }
 0x5d2   : > { %p1356_p9 = por %p1355_p8, %p1354_p6 }
 0x5d3   : > { %p1352_p5 = pneg %p1351_p2 }
 0x5d5   : > { %p1357_p7 = pnand %p1356_p9, %p1352_p5 }
 0x5d7   : > { %1360 = shalt.err (!%p1357_p7)
}
 0x5d8   : > { %1194 = dma.vmem_to_hbm [thread:$0]  (%p1587_p3), %s1746_s26, 128, %s1744_s14, %s883_s12   ;;  %v1193_v5 = vpop.f32.mrf.mxu1 }
 0x5d9 PF: > { %s1882_s28 = sld [smem:[#allocation17_spill]] }
 0x5da   : > { %s1883_s29 = sld [smem:[#allocation12_spill]] }
 0x5db   : > { %s1884_s22 = sld [smem:[#allocation21_spill]] }
 0x5df   : > { %p1205_p12 = scmp.ge.s32.totalorder %s1882_s28, 2 }
 0x5e0   : > { %s928_s15 = sand.u32 1, %s1883_s29  }
 0x5e1   : > { %p1885_p13 = scmp.ne.s32.totalorder %s1884_s22, 0  ;;  %s929_s13 = scalar_lea.sflag [#allocation4], %s928_s15 }
 0x5e3   : > { %p1199_p10 = pnand %p1205_p12, %p1885_p13 }
 0x5e5   : > { %p1200_p11 = pneg %p1199_p10 }
 0x5e7   : > { %1406 = dma.done.wait (%p1200_p11), %s929_s13, 128  }
 0x5e8   : > { %1408 = vsyncadd (%p1200_p11), %s929_s13, 4294967168  ;;  %s1886_s16 = sld [smem:[#allocation9_spill]] }
 0x5e9   : > { %s1887_s30 = sld [smem:[#allocation25_spill]] }
 0x5ee   : > { %s937_s20 = sand.u32 1, %s1886_s16  }
 0x5ef   : > { %p1888_p0 = scmp.ne.s32.totalorder %s1887_s30, 0  ;;  %s938_s24 = scalar_lea.sflag [#allocation6], %s937_s20 }
 0x5f1   : > { %p1202_p1 = pnand %p1205_p12, %p1888_p0 }
 0x5f3   : > { %p1203_p4 = pneg %p1202_p1 }
 0x5f5   : > { %1410 = dma.done.wait (%p1203_p4), %s938_s24, 128  }
 0x5f6   : > { %1412 = vsyncadd (%p1203_p4), %s938_s24, 4294967168  ;;  %s27_s23 = sadd.s32 1, %s1882_s28   ;;  %s1889_s13 = sld [smem:[#allocation10_spill]] }
 0x5f7   : > { %p24_p3 = scmp.ge.s32.totalorder %s27_s23, 6   ;;  %s1890_s14 = sld [smem:[#allocation11_spill]] }
 0x5f8   : > { %s1891_s15 = sld [smem:[#allocation24_spill]] }
 0x5f9   : > { %s1892_s16 = sld [smem:[#allocation13_spill]] }
 0x5fa   : > { %s1893_s17 = sld [smem:[#allocation14_spill]] }
 0x5fb   : > { %s1894_s18 = sld [smem:[#allocation23_spill]]  ;;  %26 = sbr.rel (!%p24_p3) target bundleno = 13 (0xd), region = 130 }
 0x5fc   : > { %s1895_s19 = sld [smem:[#allocation15_spill]] }
 0x5fd   : > { %s1896_s20 = sld [smem:[#allocation16_spill]] }
 0x5fe   : > { %s1897_s21 = sld [smem:[#allocation18_spill]] }
 0x5ff   : > { %s1898_s22 = sld [smem:[#allocation20_spill]] }
 0x600   :  { %943 = vsyncpa [#allocation4], 1 }
 0x601   :  { %945 = vsyncpa [#allocation4 + $0x1], 1 }
 0x602   :  { %946 = vsyncpa [#allocation6], 1 }
 0x603   :  { %948 = vsyncpa [#allocation6 + $0x1], 1 }

</bundles_post_ra>
